<compile_context>
chip_gen: v7x
topology: tpu7x:2x2x1
jax: 0.10.0
libtpu: 0.0.40
codegen_flags: <defaults>
</compile_context>

<pallas_src>
import math

import jax
import jax.numpy as jnp
from jax.experimental import pallas as pl
from jax.experimental.pallas import tpu as pltpu


def highway_kernel(x1k_ref, wt_ref, x1_ref, x2_ref, b_ref, o_ref, acc_ref):
    """One (i, j, k) grid step of out = x1 + sigmoid(x1 @ W^T + b) * (x2 - x1)."""
    k = pl.program_id(2)

    @pl.when(k == 0)
    def _():
        acc_ref[...] = jnp.zeros_like(acc_ref)

    # Plain [tm, tk] @ [tk, tn] MXU matmul, f32 accumulation.
    acc_ref[...] += jnp.dot(
        x1k_ref[...], wt_ref[...], preferred_element_type=jnp.float32
    )

    @pl.when(k == pl.num_programs(2) - 1)
    def _():
        z = acc_ref[...] + b_ref[...].astype(jnp.float32)   # bias added once
        gate = jax.nn.sigmoid(z)                             # exp/recip -> EUP
        x1 = x1_ref[...].astype(jnp.float32)
        x2 = x2_ref[...].astype(jnp.float32)
        out = x1 + gate * (x2 - x1)                          # fused blend form
        o_ref[...] = out.astype(o_ref.dtype)


def _round_up(x, m):
    return (x + m - 1) // m * m


def _pad2(a, rows, cols):
    r, c = a.shape
    if r == rows and c == cols:
        return a
    return jnp.pad(a, ((0, rows - r), (0, cols - c)))


def highway(x1, x2, weight, bias, *, tm=128, tn=128, tk=128, matmul_dtype=None):
    """Highway forward.

    x1, x2 : [B, H]   weight : [H, H] (PyTorch nn.Linear layout [out, in])
    bias   : [H]      matmul_dtype : optional operand dtype for the MXU
                      (e.g. jnp.bfloat16 on v6e/v7x); accumulation stays f32.
    """
    M, H = x1.shape
    out_dtype = x1.dtype

    # Pad to tile-aligned shapes (lane-dense, (8,128)-aligned blocks).
    Mp = _round_up(M, tm)
    Hp = _round_up(H, math.lcm(tn, tk))

    # Pre-transpose the weight once outside the kernel: [H_in, H_out].
    wt = weight.T

    x1p = _pad2(x1, Mp, Hp)
    x2p = _pad2(x2, Mp, Hp)
    wtp = _pad2(wt, Hp, Hp)
    bp = _pad2(bias.reshape(1, H), 1, Hp)

    x1_mm, wt_mm = x1p, wtp
    if matmul_dtype is not None:
        # One-time cast of the MXU operands only (epilogue stays f32).
        x1_mm = x1_mm.astype(matmul_dtype)
        wt_mm = wt_mm.astype(matmul_dtype)

    grid = (Mp // tm, Hp // tn, Hp // tk)

    out = pl.pallas_call(
        highway_kernel,
        out_shape=jax.ShapeDtypeStruct((Mp, Hp), out_dtype),
        grid_spec=pltpu.PrefetchScalarGridSpec(
            num_scalar_prefetch=0,
            grid=grid,
            in_specs=[
                pl.BlockSpec((tm, tk), lambda i, j, k: (i, k)),  # x1 (matmul LHS)
                pl.BlockSpec((tk, tn), lambda i, j, k: (k, j)),  # W^T tile
                pl.BlockSpec((tm, tn), lambda i, j, k: (i, j)),  # x1 (blend)
                pl.BlockSpec((tm, tn), lambda i, j, k: (i, j)),  # x2
                pl.BlockSpec((1, tn), lambda i, j, k: (0, j)),   # bias
            ],
            out_specs=pl.BlockSpec((tm, tn), lambda i, j, k: (i, j)),
            scratch_shapes=[pltpu.VMEM((tm, tn), jnp.float32)],
        ),
        compiler_params=pltpu.CompilerParams(
            dimension_semantics=("parallel", "parallel", "arbitrary")
        ),
    )(x1_mm, wt_mm, x1p, x2p, bp)

    return out[:M, :H]


if __name__ == "__main__":
    key = jax.random.PRNGKey(0)

    def run_case(B, H, matmul_dtype, atol, rtol):
        k1, k2, kw, kb = jax.random.split(jax.random.fold_in(key, B * 10007 + H), 4)
        x1 = jax.random.normal(k1, (B, H), dtype=jnp.float32)
        x2 = jax.random.normal(k2, (B, H), dtype=jnp.float32)

        # nn.Linear-style init: U(-1/sqrt(H), 1/sqrt(H))
        bound = 1.0 / (H ** 0.5)
        weight = jax.random.uniform(kw, (H, H), jnp.float32, -bound, bound)
        bias = jax.random.uniform(kb, (H,), jnp.float32, -bound, bound)

        out = highway(x1, x2, weight, bias, matmul_dtype=matmul_dtype)
        out = jax.block_until_ready(out)

        # Plain-JAX reference (same math as the PyTorch forward).
        gate = jax.nn.sigmoid(x1 @ weight.T + bias)
        ref = gate * x2 + (1.0 - gate) * x1
        assert out.shape == ref.shape
        assert jnp.allclose(out, ref, atol=atol, rtol=rtol), (
            f"mismatch B={B} H={H} matmul_dtype={matmul_dtype}"
        )

    # Tiny shapes (single padded tile).
    run_case(8, 32, None, 1e-5, 1e-5)
    # Default e_hidden=300 of the module -> exercises the multi-tile
    # (M, N, K) grid, padding, and the k==0 / k==last accumulator phases.
    run_case(256, 300, None, 1e-5, 1e-5)
    # bf16 MXU operands (v6e/v7x fast path), f32 accumulation -> looser tol.
    run_case(256, 300, jnp.bfloat16, 5e-2, 5e-2)

    print("KERNEL_OK")
</pallas_src>

<mosaic_0001>
module attributes {stable_mosaic.version = 11 : i64} {
  func.func @highway_kernel(%arg0: i32, %arg1: i32, %arg2: i32, %arg3: memref<128x128xf32, #tpu.memory_space<vmem>>, %arg4: memref<128x128xf32, #tpu.memory_space<vmem>>, %arg5: memref<128x128xf32, #tpu.memory_space<vmem>>, %arg6: memref<128x128xf32, #tpu.memory_space<vmem>>, %arg7: memref<1x128xf32, #tpu.memory_space<vmem>>, %arg8: memref<128x128xf32, #tpu.memory_space<vmem>>, %arg9: memref<128x128xf32, #tpu.memory_space<vmem>>) attributes {dimension_semantics = [#tpu.dimension_semantics<parallel>, #tpu.dimension_semantics<parallel>, #tpu.dimension_semantics<arbitrary>], iteration_bounds = array<i64: 1, 1, 1>, scalar_prefetch = 0 : i64, scratch_operands = 1 : i64, tpu.core_type = #tpu.core_type<tc>, window_params = [{transform_indices = @transform_0, window_bounds = array<i64: 128, 128>}, {transform_indices = @transform_1, window_bounds = array<i64: 128, 128>}, {transform_indices = @transform_2, window_bounds = array<i64: 128, 128>}, {transform_indices = @transform_3, window_bounds = array<i64: 128, 128>}, {transform_indices = @transform_4, window_bounds = array<i64: 1, 128>}, {transform_indices = @transform_5, window_bounds = array<i64: 128, 128>}]} {
    %c0_i32 = arith.constant 0 : i32
    %0 = arith.cmpi eq, %arg2, %c0_i32 : i32
    %1 = arith.extui %0 : i1 to i32
    %c0_i32_0 = arith.constant 0 : i32
    %2 = arith.cmpi ne, %1, %c0_i32_0 : i32
    scf.if %2 {
      %cst_10 = arith.constant 0.000000e+00 : f32
      %12 = vector.broadcast %cst_10 : f32 to vector<128x128xf32>
      %c0_11 = arith.constant 0 : index
      %c0_12 = arith.constant 0 : index
      %13 = vector.load %arg9[%c0_11, %c0_12] : memref<128x128xf32, #tpu.memory_space<vmem>>, vector<128x128xf32>
      tpu.vector_store %arg9[%c0_11, %c0_12], %12 {strides = array<i32>} : memref<128x128xf32, #tpu.memory_space<vmem>>, vector<128x128xf32>,
    } else {
    }
    %c0 = arith.constant 0 : index
    %c0_1 = arith.constant 0 : index
    %3 = vector.load %arg9[%c0, %c0_1] : memref<128x128xf32, #tpu.memory_space<vmem>>, vector<128x128xf32>
    %c0_2 = arith.constant 0 : index
    %c0_3 = arith.constant 0 : index
    %4 = vector.load %arg3[%c0_2, %c0_3] : memref<128x128xf32, #tpu.memory_space<vmem>>, vector<128x128xf32>
    %c0_4 = arith.constant 0 : index
    %c0_5 = arith.constant 0 : index
    %5 = vector.load %arg4[%c0_4, %c0_5] : memref<128x128xf32, #tpu.memory_space<vmem>>, vector<128x128xf32>
    %cst = arith.constant dense<0.000000e+00> : vector<128x128xf32>
    %6 = tpu.matmul %4, %5, %cst {dimension_numbers = #tpu.dot_dimension_numbers<[1], [0], [0], [1], [0, 0, 1, 1], [], []>} : vector<128x128xf32>, vector<128x128xf32>, vector<128x128xf32> -> vector<128x128xf32>
    %7 = arith.addf %3, %6 : vector<128x128xf32>
    %c0_6 = arith.constant 0 : index
    %c0_7 = arith.constant 0 : index
    %8 = vector.load %arg9[%c0_6, %c0_7] : memref<128x128xf32, #tpu.memory_space<vmem>>, vector<128x128xf32>
    tpu.vector_store %arg9[%c0_6, %c0_7], %7 {strides = array<i32>} : memref<128x128xf32, #tpu.memory_space<vmem>>, vector<128x128xf32>,
    %c0_i32_8 = arith.constant 0 : i32
    %9 = arith.cmpi eq, %arg2, %c0_i32_8 : i32
    %10 = arith.extui %9 : i1 to i32
    %c0_i32_9 = arith.constant 0 : i32
    %11 = arith.cmpi ne, %10, %c0_i32_9 : i32
    scf.if %11 {
      %c0_10 = arith.constant 0 : index
      %c0_11 = arith.constant 0 : index
      %12 = vector.load %arg9[%c0_10, %c0_11] : memref<128x128xf32, #tpu.memory_space<vmem>>, vector<128x128xf32>
      %c0_12 = arith.constant 0 : index
      %c0_13 = arith.constant 0 : index
      %13 = vector.load %arg7[%c0_12, %c0_13] : memref<1x128xf32, #tpu.memory_space<vmem>>, vector<1x128xf32>
      %14 = vector.broadcast %13 : vector<1x128xf32> to vector<128x128xf32>
      %15 = arith.addf %12, %14 : vector<128x128xf32>
      %16 = arith.negf %15 : vector<128x128xf32>
      %17 = math.exp %16 : vector<128x128xf32>
      %cst_14 = arith.constant 1.000000e+00 : f32
      %18 = vector.broadcast %cst_14 : f32 to vector<128x128xf32>
      %19 = arith.addf %18, %17 : vector<128x128xf32>
      %20 = arith.divf %18, %19 : vector<128x128xf32>
      %c0_15 = arith.constant 0 : index
      %c0_16 = arith.constant 0 : index
      %21 = vector.load %arg5[%c0_15, %c0_16] : memref<128x128xf32, #tpu.memory_space<vmem>>, vector<128x128xf32>
      %c0_17 = arith.constant 0 : index
      %c0_18 = arith.constant 0 : index
      %22 = vector.load %arg6[%c0_17, %c0_18] : memref<128x128xf32, #tpu.memory_space<vmem>>, vector<128x128xf32>
      %23 = arith.subf %22, %21 : vector<128x128xf32>
      %24 = arith.mulf %20, %23 : vector<128x128xf32>
      %25 = arith.addf %21, %24 : vector<128x128xf32>
      %c0_19 = arith.constant 0 : index
      %c0_20 = arith.constant 0 : index
      %26 = vector.load %arg8[%c0_19, %c0_20] : memref<128x128xf32, #tpu.memory_space<vmem>>, vector<128x128xf32>
      tpu.vector_store %arg8[%c0_19, %c0_20], %25 {strides = array<i32>} : memref<128x128xf32, #tpu.memory_space<vmem>>, vector<128x128xf32>,
    } else {
    }
    return
  }
  func.func @transform_0(%arg0: i32, %arg1: i32, %arg2: i32) -> (i32, i32) {
    %c0_i32 = arith.constant 0 : i32
    return %arg0, %arg2 : i32, i32
  }
  func.func @transform_1(%arg0: i32, %arg1: i32, %arg2: i32) -> (i32, i32) {
    %c0_i32 = arith.constant 0 : i32
    return %arg2, %arg1 : i32, i32
  }
  func.func @transform_2(%arg0: i32, %arg1: i32, %arg2: i32) -> (i32, i32) {
    %c0_i32 = arith.constant 0 : i32
    return %arg0, %arg1 : i32, i32
  }
  func.func @transform_3(%arg0: i32, %arg1: i32, %arg2: i32) -> (i32, i32) {
    %c0_i32 = arith.constant 0 : i32
    return %arg0, %arg1 : i32, i32
  }
  func.func @transform_4(%arg0: i32, %arg1: i32, %arg2: i32) -> (i32, i32) {
    %c0_i32 = arith.constant 0 : i32
    %c0_i32_0 = arith.constant 0 : i32
    return %c0_i32, %arg1 : i32, i32
  }
  func.func @transform_5(%arg0: i32, %arg1: i32, %arg2: i32) -> (i32, i32) {
    %c0_i32 = arith.constant 0 : i32
    return %arg0, %arg1 : i32, i32
  }
}

</mosaic_0001>

<bundles_post_ra>
// kernel: tpu_custom_call.1
= control target key start
LH: loop header
LB: loop body
LE: loop exit
PB: predicated region body
PF: predicated region fallthrough
CT: control target
= control target key end

     0   :  { %10 = vsyncpa [#allocation4], 0  ;;  %s1063_s0 = inlined_call_operand.hbm [shape: f32[128,128], index: 0, kind: input, shape index: {}]   ;;  %s1064_s1 = inlined_call_operand.hbm [shape: f32[128,128], index: 1, kind: input, shape index: {}]   ;;  %s1065_s2 = inlined_call_operand.hbm [shape: f32[128,128], index: 2, kind: input, shape index: {}]   ;;  %s1066_s3 = inlined_call_operand.hbm [shape: f32[128,128], index: 3, kind: input, shape index: {}]   ;;  %s1067_s4 = inlined_call_operand.vmem [shape: f32[1,128], index: 4, kind: input, shape index: {}]   ;;  %s1068_s5 = inlined_call_operand.hbm [shape: f32[128,128], index: 5, kind: output, shape index: {}]  }
   0x1   :  { %11 = vsyncpa [#allocation7], 0 }
   0x2   :  { %12 = vsyncpa [#allocation10], 0 }
   0x3   :  { %13 = vsyncpa [#allocation5], 0  ;;  %s916_s18 = smov [#allocation6]   ;;  %s917_s20 = smov [#allocation3]  }
   0x4   :  { %s31_s19 = sshll.u32 %s916_s18, 4  ;;  %s19_s21 = sshll.u32 %s917_s20, 4  ;;  %s32_s19 = int_to_ptr.vmem [resolvable:$true] %s31_s19  ;;  %s953_s21 = int_to_ptr.vmem [resolvable:$true] %s19_s21 }
   0x5   :  { %s798_s24 = scalar_lea.hbm %s1064_s1, 2048 }
   0x6   :  { %p799_p0 = scmp.ne.s32.totalorder %s1064_s1, %s798_s24  ;;  %p802_p1 = scmp.lt.u32.totalorder %s798_s24, %s1064_s1 }
   0x8   :  { %p804_p2 = pnand %p802_p1, %p799_p0 }
   0xa   :  { %807 = shalt.err (!%p804_p2)
}
   0xb   :  { %s808_s29 = scalar_lea.vmem %s32_s19, 2048  ;;  %p813_p4 = scmp.lt.s32.totalorder %s32_s19, %s32_s19 }
   0xc   :  { %p809_p3 = scmp.ne.s32.totalorder %s32_s19, %s808_s29  ;;  %p814_p5 = scmp.lt.s32.totalorder %s808_s29, %s808_s29 }
   0xe   :  { %p815_p6 = por %p814_p5, %p813_p4 }
  0x10   :  { %p816_p7 = pnand %p815_p6, %p809_p3 }
  0x12   :  { %819 = shalt.err (!%p816_p7)
}
  0x13   :  { %s918_s30 = smov 128   ;;  %s919_s6 = smov 8  }
  0x14   :  { %37 = dma.hbm_to_vmem [thread:$0]  %s1064_s1, 2048, %s32_s19, [#allocation7], %s918_s30, %s918_s30, %s919_s6  }
  0x15   :  { %s820_s11 = scalar_lea.hbm %s1063_s0, 2048 }
  0x16   :  { %p821_p8 = scmp.ne.s32.totalorder %s1063_s0, %s820_s11  ;;  %p824_p9 = scmp.lt.u32.totalorder %s820_s11, %s1063_s0 }
  0x18   :  { %p826_p10 = pnand %p824_p9, %p821_p8 }
  0x1a   :  { %829 = shalt.err (!%p826_p10)
}
  0x1b   :  { %s830_s16 = scalar_lea.vmem %s953_s21, 2048  ;;  %p835_p12 = scmp.lt.s32.totalorder %s953_s21, %s953_s21 }
  0x1c   :  { %p831_p11 = scmp.ne.s32.totalorder %s953_s21, %s830_s16  ;;  %p836_p13 = scmp.lt.s32.totalorder %s830_s16, %s830_s16 }
  0x1e   :  { %p837_p0 = por %p836_p13, %p835_p12 }
  0x20   :  { %p838_p1 = pnand %p837_p0, %p831_p11 }
  0x22   :  { %841 = shalt.err (!%p838_p1)
}
  0x23   :  { %25 = dma.hbm_to_vmem [thread:$0]  %s1063_s0, 2048, %s953_s21, [#allocation4], %s918_s30, %s918_s30, %s919_s6  }
  0x24   :  { %s920_s18 = smov [#allocation8]   ;;  %s921_s20 = smov [#allocation9]  }
  0x25   :  { %s43_s19 = sshll.u32 %s920_s18, 4  ;;  %s55_s22 = sshll.u32 %s921_s20, 4  ;;  %s44_s19 = int_to_ptr.vmem [resolvable:$true] %s43_s19  ;;  %s990_s22 = int_to_ptr.vmem [resolvable:$true] %s55_s22 }
  0x26   :  { %s842_s25 = scalar_lea.hbm %s1065_s2, 2048 }
  0x27   :  { %p843_p2 = scmp.ne.s32.totalorder %s1065_s2, %s842_s25  ;;  %p846_p3 = scmp.lt.u32.totalorder %s842_s25, %s1065_s2 }
  0x29   :  { %p848_p4 = pnand %p846_p3, %p843_p2 }
  0x2b   :  { %851 = shalt.err (!%p848_p4)
}
  0x2c   :  { %s852_s0 = scalar_lea.vmem %s44_s19, 2048  ;;  %p857_p6 = scmp.lt.s32.totalorder %s44_s19, %s44_s19 }
  0x2d   :  { %p853_p5 = scmp.ne.s32.totalorder %s44_s19, %s852_s0  ;;  %p858_p7 = scmp.lt.s32.totalorder %s852_s0, %s852_s0 }
  0x2f   :  { %p859_p8 = por %p858_p7, %p857_p6 }
  0x31   :  { %p860_p9 = pnand %p859_p8, %p853_p5 }
  0x33   :  { %863 = shalt.err (!%p860_p9)
}
  0x34   :  { %49 = dma.hbm_to_vmem [thread:$0]  %s1065_s2, 2048, %s44_s19, [#allocation7], %s918_s30, %s918_s30, %s919_s6  }
  0x35   :  { %s864_s10 = scalar_lea.hbm %s1066_s3, 2048 }
  0x36   :  { %p865_p10 = scmp.ne.s32.totalorder %s1066_s3, %s864_s10  ;;  %p868_p11 = scmp.lt.u32.totalorder %s864_s10, %s1066_s3 }
  0x38   :  { %p870_p12 = pnand %p868_p11, %p865_p10 }
  0x3a   :  { %873 = shalt.err (!%p870_p12)
}
  0x3b   :  { %s874_s15 = scalar_lea.vmem %s990_s22, 2048  ;;  %p879_p0 = scmp.lt.s32.totalorder %s990_s22, %s990_s22 }
  0x3c   :  { %p875_p13 = scmp.ne.s32.totalorder %s990_s22, %s874_s15  ;;  %p880_p1 = scmp.lt.s32.totalorder %s874_s15, %s874_s15 }
  0x3e   :  { %p881_p2 = por %p880_p1, %p879_p0 }
  0x40   :  { %p882_p3 = pnand %p881_p2, %p875_p13 }
  0x42   :  { %885 = shalt.err (!%p882_p3)
}
  0x43   :  { %61 = dma.hbm_to_vmem [thread:$0]  %s1066_s3, 2048, %s990_s22, [#allocation10], %s918_s30, %s918_s30, %s919_s6  }
  0x44   :  { %908 = dma.done.wait [#allocation4], 2048  }
  0x45   :  { %909 = vsyncadd [#allocation4], 4294965248 }
  0x46   :  { %910 = dma.done.wait [#allocation7], 4096  }
  0x47   :  { %911 = vsyncadd [#allocation7], 4294963200 }
  0x48   :  { %912 = dma.done.wait [#allocation10], 2048  }
  0x49   :  { %913 = vsyncadd [#allocation10], 4294965248  ;;  %v128_v0 = vld [vmem:[#allocation6] sm:$0xff]  ;;  %v129_v1 = vld [vmem:[#allocation6 + $0x8] sm:$0xff] }
  0x4a   :  { %v130_v2 = vld [vmem:[#allocation6 + $0x10] sm:$0xff]  ;;  %v679_v3 = vpack.c.bf16 %v129_v1, %v128_v0  ;;  %v131_v4 = vld [vmem:[#allocation6 + $0x18] sm:$0xff]  ;;  %v132_v6 = vld [vmem:[#allocation6 + $0x20] sm:$0xff] }
  0x4b   :  { %v683_v5 = vpack.c.bf16 %v131_v4, %v130_v2  ;;  %v133_v7 = vld [vmem:[#allocation6 + $0x28] sm:$0xff]  ;;  %v112_v9 = vld [vmem:[#allocation3] sm:$0xff]  ;;  %v134_v11 = vld [vmem:[#allocation6 + $0x30] sm:$0xff] }
  0x4c   :  { %680 = vmatprep.subr.bf16.mxu0 %v679_v3  ;;  %711 = vmatprep.subr.bf16.mxu1 %v679_v3  ;;  %v687_v8 = vpack.c.bf16 %v133_v7, %v132_v6  ;;  %v120_v10 = vld [vmem:[#allocation3 + $0x40] sm:$0xff]  ;;  %v135_v12 = vld [vmem:[#allocation6 + $0x38] sm:$0xff]  ;;  %v137_v15 = vld [vmem:[#allocation6 + $0x48] sm:$0xff] }
  0x4d   :  { %682 = vmatpush3.bf16.msra.mxu0 %v679_v3  ;;  %719 = vmatpush3.bf16.msra.mxu1 %v679_v3  ;;  %v691_v13 = vpack.c.bf16 %v135_v12, %v134_v11  ;;  %v136_v14 = vld [vmem:[#allocation6 + $0x40] sm:$0xff]  ;;  %v138_v17 = vld [vmem:[#allocation6 + $0x50] sm:$0xff]  ;;  %v139_v18 = vld [vmem:[#allocation6 + $0x58] sm:$0xff] }
  0x4e   :  { %684 = vmatprep.subr.bf16.mxu0 %v683_v5  ;;  %712 = vmatprep.subr.bf16.mxu1 %v683_v5  ;;  %v695_v16 = vpack.c.bf16 %v137_v15, %v136_v14  ;;  %v699_v19 = vpack.c.bf16 %v139_v18, %v138_v17  ;;  %v140_v20 = vld [vmem:[#allocation6 + $0x60] sm:$0xff]  ;;  %v141_v21 = vld [vmem:[#allocation6 + $0x68] sm:$0xff]  ;;  %v142_v23 = vld [vmem:[#allocation6 + $0x70] sm:$0xff] }
  0x4f   :  { %655 = vmatprep.mubr.f32.mxu0 %v112_v9  ;;  %667 = vmatprep.mubr.f32.mxu1 %v120_v10  ;;  %v703_v22 = vpack.c.bf16 %v141_v21, %v140_v20  ;;  %v143_v24 = vld [vmem:[#allocation6 + $0x78] sm:$0xff]  ;;  %v113_v26 = vld [vmem:[#allocation3 + $0x8] sm:$0xff]  ;;  %v114_v28 = vld [vmem:[#allocation3 + $0x10] sm:$0xff] }
  0x50   :  { %v707_v25 = vpack.c.bf16 %v143_v24, %v142_v23  ;;  %v121_v27 = vld [vmem:[#allocation3 + $0x48] sm:$0xff]  ;;  %v122_v29 = vld [vmem:[#allocation3 + $0x50] sm:$0xff]  ;;  %v115_v30 = vld [vmem:[#allocation3 + $0x18] sm:$0xff] }
  0x51   :  { %686 = vmatpush3.bf16.msra.mxu0 %v683_v5  ;;  %720 = vmatpush3.bf16.msra.mxu1 %v683_v5  ;;  %v123_v31 = vld [vmem:[#allocation3 + $0x58] sm:$0xff]  ;;  %v116_v32 = vld [vmem:[#allocation3 + $0x20] sm:$0xff]  ;;  %v117_v34 = vld [vmem:[#allocation3 + $0x28] sm:$0xff] }
  0x52   :  { %688 = vmatprep.subr.bf16.mxu0 %v687_v8  ;;  %713 = vmatprep.subr.bf16.mxu1 %v687_v8  ;;  %v124_v33 = vld [vmem:[#allocation3 + $0x60] sm:$0xff]  ;;  %v125_v35 = vld [vmem:[#allocation3 + $0x68] sm:$0xff]  ;;  %v118_v36 = vld [vmem:[#allocation3 + $0x30] sm:$0xff] }
  0x53   :  { %v126_v37 = vld [vmem:[#allocation3 + $0x70] sm:$0xff]  ;;  %v119_v38 = vld [vmem:[#allocation3 + $0x38] sm:$0xff]  ;;  %v1030_v40 = vld [vmem:[%s1067_s4] ss:$0 sm:$0xff]  ;;  %s922_s4 = smov [#allocation11]  }
  0x54   :  { %v127_v39 = vld [vmem:[#allocation3 + $0x78] sm:$0xff]  ;;  %s560_s17 = sshll.u32 %s922_s4, 4  ;;  %s561_s17 = int_to_ptr.vmem [resolvable:$true] %s560_s17 }
  0x55   :  { %690 = vmatpush3.bf16.msra.mxu0 %v687_v8  ;;  %721 = vmatpush3.bf16.msra.mxu1 %v687_v8  ;;  %s886_s18 = scalar_lea.vmem %s561_s17, 2048  ;;  %p891_p5 = scmp.lt.s32.totalorder %s561_s17, %s561_s17 }
  0x56   :  { %692 = vmatprep.subr.bf16.mxu0 %v691_v13  ;;  %714 = vmatprep.subr.bf16.mxu1 %v691_v13  ;;  %p887_p4 = scmp.ne.s32.totalorder %s561_s17, %s886_s18  ;;  %p892_p6 = scmp.lt.s32.totalorder %s886_s18, %s886_s18 }
  0x58   :  { %p893_p7 = por %p892_p6, %p891_p5 }
  0x59   :  { %694 = vmatpush3.bf16.msra.mxu0 %v691_v13  ;;  %722 = vmatpush3.bf16.msra.mxu1 %v691_v13 }
  0x5a   :  { %696 = vmatprep.subr.bf16.mxu0 %v695_v16  ;;  %715 = vmatprep.subr.bf16.mxu1 %v695_v16  ;;  %p894_p8 = pnand %p893_p7, %p887_p4 }
  0x5d   :  { %698 = vmatpush3.bf16.msra.mxu0 %v695_v16  ;;  %723 = vmatpush3.bf16.msra.mxu1 %v695_v16 }
  0x5e   :  { %700 = vmatprep.subr.bf16.mxu0 %v699_v19  ;;  %716 = vmatprep.subr.bf16.mxu1 %v699_v19 }
  0x61   :  { %702 = vmatpush3.bf16.msra.mxu0 %v699_v19  ;;  %724 = vmatpush3.bf16.msra.mxu1 %v699_v19 }
  0x62   :  { %704 = vmatprep.subr.bf16.mxu0 %v703_v22  ;;  %717 = vmatprep.subr.bf16.mxu1 %v703_v22 }
  0x65   :  { %706 = vmatpush3.bf16.msra.mxu0 %v703_v22  ;;  %725 = vmatpush3.bf16.msra.mxu1 %v703_v22 }
  0x66   :  { %708 = vmatprep.subr.bf16.mxu0 %v707_v25  ;;  %718 = vmatprep.subr.bf16.mxu1 %v707_v25 }
  0x69   :  { %710 = vmatpush3.bf16.msra.mxu0 %v707_v25  ;;  %726 = vmatpush3.bf16.msra.mxu1 %v707_v25 }
  0x6c   :  { %656 = vmatmul.mubr.f32.vlgmr.msra.gmra.mrb[0].mxu0 %v113_v26  ;;  %668 = vmatmul.mubr.f32.vlgmr.msra.gmra.mrb[0].mxu1 %v121_v27 }
  0x6d   :  { %658 = vmatprep.mubr.f32.mxu0 %v114_v28  ;;  %670 = vmatprep.mubr.f32.mxu1 %v122_v29 }
  0x70   :  { %659 = vmatmul.mubr.f32.gmra.mrb[2].mxu0 %v115_v30  ;;  %671 = vmatmul.mubr.f32.gmra.mrb[2].mxu1 %v123_v31 }
  0x71   :  { %661 = vmatprep.mubr.f32.mxu0 %v116_v32  ;;  %673 = vmatprep.mubr.f32.mxu1 %v124_v33  ;;  %v460_v33 = vld [vmem:[#allocation8 + $0x8] sm:$0xff] }
  0x74   :  { %662 = vmatmul.mubr.f32.gmra.mrb[4].mxu0 %v117_v34  ;;  %674 = vmatmul.mubr.f32.gmra.mrb[4].mxu1 %v125_v35  ;;  %v476_v34 = vld [vmem:[#allocation9 + $0x8] sm:$0xff] }
  0x75   :  { %664 = vmatprep.mubr.f32.mxu0 %v118_v36  ;;  %676 = vmatprep.mubr.f32.mxu1 %v126_v37  ;;  %v468_v37 = vld [vmem:[#allocation8 + $0x48] sm:$0xff] }
  0x78   :  { %665 = vmatmul.mubr.f32.gmra.mrb[6].mxu0 %v119_v38  ;;  %677 = vmatmul.mubr.f32.gmra.mrb[6].mxu1 %v127_v39  ;;  %v484_v38 = vld [vmem:[#allocation9 + $0x48] sm:$0xff] }
 0x13f   :  { %v657_v41 = vpop.f32.mrb[0].mxu0  ;;  %v669_v42 = vpop.f32.mrb[0].mxu1 }
 0x140   :  { %v348_v43 = vadd.f32 %v657_v41, %v1030_v40  ;;  %v356_v44 = vadd.f32 %v669_v42, %v1030_v40  ;;  %v210_v45 = vpop.f32.mrb[1].mxu0  ;;  %v250_v46 = vpop.f32.mrb[1].mxu1 }
 0x141   :  { %v347_v47 = vadd.f32 %v1030_v40, %v210_v45  ;;  %v355_v48 = vadd.f32 %v1030_v40, %v250_v46 }
 0x142   :  { %v576_v49 = vmul.f32 -1.442695, %v348_v43  ;;  %v584_v50 = vmul.f32 -1.442695, %v356_v44  ;;  %v459_v43 = vld [vmem:[#allocation8] sm:$0xff] }
 0x143   :  { %v575_v51 = vmul.f32 -1.442695, %v347_v47  ;;  %v583_v52 = vmul.f32 -1.442695, %v355_v48  ;;  %v660_v53 = vpop.f32.mrb[2].mxu0  ;;  %v672_v54 = vpop.f32.mrb[2].mxu1  ;;  %v492_v48 = vsub.f32 %v476_v34, %v460_v33 }
 0x144   :  { %734 = vpow2.f32 %v576_v49  ;;  %v350_v55 = vadd.f32 %v660_v53, %v1030_v40  ;;  %v358_v56 = vadd.f32 %v672_v54, %v1030_v40  ;;  %v220_v57 = vpop.f32.mrb[3].mxu0  ;;  %v260_v58 = vpop.f32.mrb[3].mxu1  ;;  %v475_v44 = vld [vmem:[#allocation9] sm:$0xff]  ;;  %v500_v54 = vsub.f32 %v484_v38, %v468_v37 }
 0x145   :  { %736 = vpow2.f32 %v584_v50  ;;  %v349_v59 = vadd.f32 %v1030_v40, %v220_v57  ;;  %v357_v60 = vadd.f32 %v1030_v40, %v260_v58  ;;  %v467_v49 = vld [vmem:[#allocation8 + $0x40] sm:$0xff] }
 0x146   :  { %738 = vpow2.f32 %v575_v51  ;;  %v578_v61 = vmul.f32 -1.442695, %v350_v55  ;;  %v586_v62 = vmul.f32 -1.442695, %v358_v56  ;;  %v483_v50 = vld [vmem:[#allocation9 + $0x40] sm:$0xff]  ;;  %v462_v55 = vld [vmem:[#allocation8 + $0x18] sm:$0xff] }
 0x147   :  { %740 = vpow2.f32 %v583_v52  ;;  %v577_v63 = vmul.f32 -1.442695, %v349_v59  ;;  %v585_v0 = vmul.f32 -1.442695, %v357_v60  ;;  %v663_v1 = vpop.f32.mrb[4].mxu0  ;;  %v675_v2 = vpop.f32.mrb[4].mxu1  ;;  %v491_v59 = vsub.f32 %v475_v44, %v459_v43 }
 0x148   :  { %742 = vpow2.f32 %v578_v61  ;;  %v352_v3 = vadd.f32 %v663_v1, %v1030_v40  ;;  %v360_v4 = vadd.f32 %v675_v2, %v1030_v40  ;;  %v230_v5 = vpop.f32.mrb[5].mxu0  ;;  %v270_v6 = vpop.f32.mrb[5].mxu1  ;;  %v478_v56 = vld [vmem:[#allocation9 + $0x18] sm:$0xff]  ;;  %v499_v1 = vsub.f32 %v483_v50, %v467_v49  ;;  %v461_v2 = vld [vmem:[#allocation8 + $0x10] sm:$0xff]  ;;  %v487_v34 = vld [vmem:[#allocation9 + $0x60] sm:$0xff] }
 0x149   :  { %744 = vpow2.f32 %v586_v62  ;;  %v351_v7 = vadd.f32 %v1030_v40, %v230_v5  ;;  %v359_v8 = vadd.f32 %v1030_v40, %v270_v6  ;;  %v470_v60 = vld [vmem:[#allocation8 + $0x58] sm:$0xff] }
 0x14a   :  { %746 = vpow2.f32 %v577_v63  ;;  %v580_v9 = vmul.f32 -1.442695, %v352_v3  ;;  %v588_v10 = vmul.f32 -1.442695, %v360_v4  ;;  %v486_v61 = vld [vmem:[#allocation9 + $0x58] sm:$0xff]  ;;  %v477_v3 = vld [vmem:[#allocation9 + $0x10] sm:$0xff] }
 0x14b   :  { %748 = vpow2.f32 %v585_v0  ;;  %v579_v11 = vmul.f32 -1.442695, %v351_v7  ;;  %v587_v12 = vmul.f32 -1.442695, %v359_v8  ;;  %v666_v13 = vpop.f32.mrb[6].mxu0  ;;  %v678_v14 = vpop.f32.mrb[6].mxu1  ;;  %v494_v7 = vsub.f32 %v478_v56, %v462_v55 }
 0x14c   :  { %750 = vpow2.f32 %v580_v9  ;;  %v354_v15 = vadd.f32 %v666_v13, %v1030_v40  ;;  %v240_v16 = vpop.f32.mrb[7].mxu0  ;;  %v280_v17 = vpop.f32.mrb[7].mxu1  ;;  %v362_v41 = vadd.f32 %v678_v14, %v1030_v40  ;;  %v469_v8 = vld [vmem:[#allocation8 + $0x50] sm:$0xff]  ;;  %v502_v13 = vsub.f32 %v486_v61, %v470_v60  ;;  %v464_v14 = vld [vmem:[#allocation8 + $0x28] sm:$0xff] }
 0x14d   :  { %752 = vpow2.f32 %v588_v10  ;;  %v353_v46 = vadd.f32 %v1030_v40, %v240_v16  ;;  %v361_v52 = vadd.f32 %v1030_v40, %v280_v17  ;;  %v485_v9 = vld [vmem:[#allocation9 + $0x50] sm:$0xff] }
 0x14e   :  { %v735_v18 = vpop.eup %734  ;;  %754 = vpow2.f32 %v579_v11  ;;  %v582_v19 = vmul.f32 -1.442695, %v354_v15  ;;  %v590_v63 = vmul.f32 -1.442695, %v362_v41  ;;  %v480_v15 = vld [vmem:[#allocation9 + $0x28] sm:$0xff] }
 0x14f   :  { %v737_v20 = vpop.eup %736  ;;  %v412_v21 = vadd.f32 1.0, %v735_v18  ;;  %756 = vpow2.f32 %v587_v12  ;;  %v581_v40 = vmul.f32 -1.442695, %v353_v46  ;;  %v589_v10 = vmul.f32 -1.442695, %v361_v52 }
 0x150   :  { %v739_v22 = vpop.eup %738  ;;  %v420_v23 = vadd.f32 1.0, %v737_v20  ;;  %758 = vpow2.f32 %v582_v19  ;;  %v493_v19 = vsub.f32 %v477_v3, %v461_v2  ;;  %v472_v20 = vld [vmem:[#allocation8 + $0x68] sm:$0xff] }
 0x151   :  { %v741_v24 = vpop.eup %740  ;;  %760 = vrcp.f32 %v412_v21  ;;  %v411_v25 = vadd.f32 1.0, %v739_v22  ;;  %v488_v21 = vld [vmem:[#allocation9 + $0x68] sm:$0xff] }
 0x152   :  { %v743_v26 = vpop.eup %742  ;;  %762 = vrcp.f32 %v420_v23  ;;  %v419_v27 = vadd.f32 1.0, %v741_v24  ;;  %v504_v38 = vsub.f32 %v488_v21, %v472_v20 }
 0x153   :  { %v745_v28 = vpop.eup %744  ;;  %764 = vrcp.f32 %v411_v25  ;;  %v414_v29 = vadd.f32 1.0, %v743_v26  ;;  %v501_v25 = vsub.f32 %v485_v9, %v469_v8  ;;  %v463_v26 = vld [vmem:[#allocation8 + $0x20] sm:$0xff]  ;;  %v465_v9 = vld [vmem:[#allocation8 + $0x30] sm:$0xff] }
 0x154   :  { %v747_v30 = vpop.eup %746  ;;  %766 = vrcp.f32 %v419_v27  ;;  %v422_v31 = vadd.f32 1.0, %v745_v28  ;;  %v479_v27 = vld [vmem:[#allocation9 + $0x20] sm:$0xff] }
 0x155   :  { %v749_v32 = vpop.eup %748  ;;  %768 = vrcp.f32 %v414_v29  ;;  %v413_v35 = vadd.f32 1.0, %v747_v30 }
 0x156   :  { %v751_v36 = vpop.eup %750  ;;  %770 = vrcp.f32 %v422_v31  ;;  %v421_v39 = vadd.f32 1.0, %v749_v32  ;;  %v496_v31 = vsub.f32 %v480_v15, %v464_v14  ;;  %v471_v32 = vld [vmem:[#allocation8 + $0x60] sm:$0xff] }
 0x157   :  { %v753_v42 = vpop.eup %752  ;;  %772 = vrcp.f32 %v413_v35  ;;  %v416_v45 = vadd.f32 1.0, %v751_v36 }
 0x158   :  { %v755_v47 = vpop.eup %754  ;;  %774 = vrcp.f32 %v421_v39  ;;  %v424_v51 = vadd.f32 1.0, %v753_v42  ;;  %v466_v39 = vld [vmem:[#allocation8 + $0x38] sm:$0xff] }
 0x159   :  { %v757_v53 = vpop.eup %756  ;;  %776 = vrcp.f32 %v416_v45  ;;  %v415_v57 = vadd.f32 1.0, %v755_v47  ;;  %v495_v45 = vsub.f32 %v479_v27, %v463_v26 }
 0x15a   :  { %v759_v58 = vpop.eup %758  ;;  %778 = vrcp.f32 %v424_v51  ;;  %v423_v62 = vadd.f32 1.0, %v757_v53 }
 0x15b   :  { %v761_v0 = vpop.eup %760  ;;  %780 = vrcp.f32 %v415_v57  ;;  %v418_v4 = vadd.f32 1.0, %v759_v58 }
 0x15c   :  { %v763_v5 = vpop.eup %762  ;;  %v508_v6 = vmul.f32 %v761_v0, %v492_v48  ;;  %782 = vrcp.f32 %v423_v62  ;;  %v503_v48 = vsub.f32 %v487_v34, %v471_v32 }
 0x15d   :  { %v765_v11 = vpop.eup %764  ;;  %v516_v12 = vmul.f32 %v763_v5, %v500_v54  ;;  %784 = vrcp.f32 %v418_v4 }
 0x15e   :  { %v767_v16 = vpop.eup %766  ;;  %v524_v17 = vadd.f32 %v508_v6, %v460_v33  ;;  %v507_v18 = vmul.f32 %v765_v11, %v491_v59  ;;  %786 = vpow2.f32 %v590_v63  ;;  %v473_v11 = vld [vmem:[#allocation8 + $0x70] sm:$0xff] }
 0x15f   :  { %v769_v22 = vpop.eup %768  ;;  %v532_v23 = vadd.f32 %v516_v12, %v468_v37  ;;  %v515_v24 = vmul.f32 %v767_v16, %v499_v1  ;;  %788 = vpow2.f32 %v581_v40  ;;  %v482_v37 = vld [vmem:[#allocation9 + $0x38] sm:$0xff]  ;;  %v489_v12 = vld [vmem:[#allocation9 + $0x70] sm:$0xff] }
 0x160   :  { %v771_v28 = vpop.eup %770  ;;  %540 = vst [vmem:[#allocation11 + $0x8] sm:$0xff] %v524_v17  ;;  %v523_v29 = vadd.f32 %v507_v18, %v459_v43  ;;  %v510_v30 = vmul.f32 %v769_v22, %v494_v7  ;;  %790 = vpow2.f32 %v589_v10  ;;  %v498_v53 = vsub.f32 %v482_v37, %v466_v39  ;;  %v474_v7 = vld [vmem:[#allocation8 + $0x78] sm:$0xff]  ;;  %v481_v10 = vld [vmem:[#allocation9 + $0x30] sm:$0xff] }
 0x161   :  { %v773_v33 = vpop.eup %772  ;;  %548 = vst [vmem:[#allocation11 + $0x48] sm:$0xff] %v532_v23  ;;  %v531_v35 = vadd.f32 %v515_v24, %v467_v49  ;;  %v518_v36 = vmul.f32 %v771_v28, %v502_v13  ;;  %v505_v15 = vsub.f32 %v489_v12, %v473_v11 }
 0x162   :  { %v775_v41 = vpop.eup %774  ;;  %539 = vst [vmem:[#allocation11] sm:$0xff] %v523_v29  ;;  %v526_v42 = vadd.f32 %v510_v30, %v462_v55  ;;  %v509_v44 = vmul.f32 %v773_v33, %v493_v19 }
 0x163   :  { %v777_v46 = vpop.eup %776  ;;  %547 = vst [vmem:[#allocation11 + $0x40] sm:$0xff] %v531_v35  ;;  %v534_v43 = vadd.f32 %v518_v36, %v470_v60  ;;  %v517_v47 = vmul.f32 %v775_v41, %v501_v25 }
 0x164   :  { %v779_v50 = vpop.eup %778  ;;  %542 = vst [vmem:[#allocation11 + $0x18] sm:$0xff] %v526_v42  ;;  %v525_v51 = vadd.f32 %v509_v44, %v461_v2  ;;  %v512_v52 = vmul.f32 %v777_v46, %v496_v31 }
 0x165   :  { %v781_v49 = vpop.eup %780  ;;  %550 = vst [vmem:[#allocation11 + $0x58] sm:$0xff] %v534_v43  ;;  %v533_v54 = vadd.f32 %v517_v47, %v469_v8  ;;  %v520_v56 = vmul.f32 %v779_v50, %v504_v38  ;;  %v490_v8 = vld [vmem:[#allocation9 + $0x78] sm:$0xff] }
 0x166   :  { %v783_v57 = vpop.eup %782  ;;  %541 = vst [vmem:[#allocation11 + $0x10] sm:$0xff] %v525_v51  ;;  %v528_v58 = vadd.f32 %v512_v52, %v464_v14  ;;  %v511_v55 = vmul.f32 %v781_v49, %v495_v45  ;;  %v506_v13 = vsub.f32 %v490_v8, %v474_v7  ;;  %v497_v14 = vsub.f32 %v481_v10, %v465_v9 }
 0x167   :  { %v785_v59 = vpop.eup %784  ;;  %549 = vst [vmem:[#allocation11 + $0x50] sm:$0xff] %v533_v54  ;;  %v536_v61 = vadd.f32 %v520_v56, %v472_v20  ;;  %v519_v62 = vmul.f32 %v783_v57, %v503_v48 }
 0x168   :  { %v787_v60 = vpop.eup %786  ;;  %544 = vst [vmem:[#allocation11 + $0x28] sm:$0xff] %v528_v58  ;;  %v527_v63 = vadd.f32 %v511_v55, %v463_v26  ;;  %v514_v0 = vmul.f32 %v785_v59, %v498_v53 }
 0x169   :  { %v789_v1 = vpop.eup %788  ;;  %552 = vst [vmem:[#allocation11 + $0x68] sm:$0xff] %v536_v61  ;;  %v535_v2 = vadd.f32 %v519_v62, %v471_v32  ;;  %v426_v3 = vadd.f32 1.0, %v787_v60 }
 0x16a   :  { %v791_v4 = vpop.eup %790  ;;  %543 = vst [vmem:[#allocation11 + $0x20] sm:$0xff] %v527_v63  ;;  %v530_v40 = vadd.f32 %v514_v0, %v466_v39  ;;  %v417_v5 = vadd.f32 1.0, %v789_v1 }
 0x16b   :  { %551 = vst [vmem:[#allocation11 + $0x60] sm:$0xff] %v535_v2  ;;  %792 = vrcp.f32 %v426_v3  ;;  %v425_v6 = vadd.f32 1.0, %v791_v4 }
 0x16c   :  { %546 = vst [vmem:[#allocation11 + $0x38] sm:$0xff] %v530_v40  ;;  %794 = vrcp.f32 %v417_v5 }
 0x16d   :  { %796 = vrcp.f32 %v425_v6 }
 0x175   :  { %v793_v16 = vpop.eup %792 }
 0x176   :  { %v795_v17 = vpop.eup %794  ;;  %v522_v18 = vmul.f32 %v793_v16, %v506_v13 }
 0x177   :  { %v797_v19 = vpop.eup %796  ;;  %v513_v20 = vmul.f32 %v795_v17, %v497_v14 }
 0x178   :  { %v538_v21 = vadd.f32 %v522_v18, %v474_v7  ;;  %v521_v22 = vmul.f32 %v797_v19, %v505_v15 }
 0x179   :  { %v529_v23 = vadd.f32 %v513_v20, %v465_v9 }
 0x17a   :  { %554 = vst [vmem:[#allocation11 + $0x78] sm:$0xff] %v538_v21  ;;  %v537_v24 = vadd.f32 %v521_v22, %v473_v11 }
 0x17b   :  { %545 = vst [vmem:[#allocation11 + $0x30] sm:$0xff] %v529_v23 }
 0x17c   :  { %553 = vst [vmem:[#allocation11 + $0x70] sm:$0xff] %v537_v24 }
 0x17d   :  { %897 = shalt.err (!%p894_p8)
}
 0x17e   :  { %s898_s22 = scalar_lea.hbm %s1068_s5, 2048 }
 0x17f   :  { %p899_p9 = scmp.ne.s32.totalorder %s1068_s5, %s898_s22  ;;  %p902_p10 = scmp.lt.u32.totalorder %s898_s22, %s1068_s5 }
 0x181   :  { %p904_p11 = pnand %p902_p10, %p899_p9 }
 0x183   :  { %907 = shalt.err (!%p904_p11)
}
 0x184   :  { %566 = dma.vmem_to_hbm [thread:$0]  %s561_s17, 2048, %s1068_s5, [#allocation5], %s918_s30, %s918_s30, %s919_s6  }
 0x185   :  { %914 = dma.done.wait [#allocation5], 2048  }
 0x186   :  { %915 = vsyncadd [#allocation5], 4294965248 }
 0x187   :  { %570 = vsyncpa [#allocation4], 1 }
 0x188   :  { %571 = vsyncpa [#allocation7], 1 }
 0x189   :  { %572 = vsyncpa [#allocation10], 1 }
 0x18a   :  { %573 = vsyncpa [#allocation5], 1 }

</bundles_post_ra>
